<compile_context>
chip_gen: v7x
topology: tpu7x:2x2x1
jax: 0.10.0
libtpu: 0.0.40
codegen_flags: <defaults>
</compile_context>

<pallas_src>
import jax
import jax.numpy as jnp
from jax.experimental import pallas as pl
from jax.experimental.pallas import tpu as pltpu


def _inv1x1_kernel(w_ref, z_ref, o_ref):
    # w_ref: (C, C)   z_ref / o_ref: (B, C, TILE_T)
    w = w_ref[...]
    for b in range(z_ref.shape[0]):  # B is small (2..12) and static
        o_ref[b] = jnp.dot(
            w, z_ref[b], preferred_element_type=jnp.float32
        ).astype(o_ref.dtype)


def _vmem_capacity_bytes() -> int:
    """Physical VMEM of the current generation; conservative 64 MiB fallback."""
    try:
        cap = getattr(pltpu.get_tpu_info(), "vmem_capacity_bytes", None)
        if cap:
            return int(cap)
    except Exception:
        pass
    return 64 * 1024 * 1024


def _plan_tiles(B: int, C: int, T: int, itemsize: int):
    """Pick TILE_T, grid size and a VMEM limit from the per-gen VMEM budget."""
    sublane = max(8, 32 // itemsize)            # 8 (f32), 16 (bf16), 32 (int8)
    c_pad = -(-C // sublane) * sublane          # sublane-padded channel count
    bytes_per_col = B * c_pad * itemsize        # padded bytes per time column

    vmem_cap = _vmem_capacity_bytes()
    small_vmem = vmem_cap <= 64 * 1024 * 1024   # v7x-class
    headroom = (12 if small_vmem else 24) * 1024 * 1024
    usable = vmem_cap - headroom
    # 2x double-buffered input tiles + 2x output tiles live at once; cap the
    # per-tile target where HBM-bandwidth returns flatten out.
    per_tile_cap = (8 if small_vmem else 16) * 1024 * 1024
    tile_target = max(1 << 20, min(usable // 4, per_tile_cap))

    max_tile_t = max(128, (tile_target // bytes_per_col) // 128 * 128)
    if T <= max_tile_t:
        tile_t = T              # single full-extent block (legal for any T)
    else:
        tile_t = max_tile_t     # multiple of 128; masked tail via cdiv grid
    n_t = pl.cdiv(T, tile_t)

    tile_bytes = B * c_pad * tile_t * itemsize
    w_tile_bytes = c_pad * (-(-C // 128) * 128) * itemsize
    need = 4 * tile_bytes + 2 * w_tile_bytes + (2 << 20)  # + compiler scratch slack
    vmem_limit = int(
        min(vmem_cap - 4 * 1024 * 1024, max(need, 16 * 1024 * 1024))
    )
    return tile_t, n_t, vmem_limit


def invertible_1x1_conv_forward(z: jax.Array, weight: jax.Array):
    """Forward pass of Invertible1x1Conv.

    Args:
      z:      (B, C, T) float32
      weight: (C, C)    float32  (squeezed conv weight)

    Returns:
      (z_out, log_det_w) with z_out of shape (B, C, T) and a scalar log_det_w.
    """
    B, C, T = z.shape
    itemsize = jnp.dtype(z.dtype).itemsize
    tile_t, n_t, vmem_limit = _plan_tiles(B, C, T, itemsize)

    cost = pl.CostEstimate(
        flops=2 * B * C * C * T,
        transcendentals=0,
        bytes_accessed=2 * B * C * T * itemsize
        + C * C * jnp.dtype(weight.dtype).itemsize,
    )

    z_out = pl.pallas_call(
        _inv1x1_kernel,
        out_shape=jax.ShapeDtypeStruct((B, C, T), z.dtype),
        grid=(n_t,),
        in_specs=[
            # Full (C, C) weight; constant index_map -> DMA'd once, resident.
            pl.BlockSpec((C, C), lambda t: (0, 0)),
            # Whole batch x (C, TILE_T) time slab per grid step.
            pl.BlockSpec((B, C, tile_t), lambda t: (0, 0, t)),
        ],
        out_specs=pl.BlockSpec((B, C, tile_t), lambda t: (0, 0, t)),
        compiler_params=pltpu.CompilerParams(
            # Note: on v7x, pltpu.CORE_PARALLEL could be tried here if a
            # profile shows only one TensorCore active.
            dimension_semantics=("parallel",),
            vmem_limit_bytes=vmem_limit,
        ),
        cost_estimate=cost,
    )(weight, z)

    # torch.logdet: log(det) for det > 0, nan for det < 0, -inf for det == 0.
    # TODO(synk): logdet (LU) has no clean Pallas equivalent; computed in JAX glue.
    sign, logabsdet = jnp.linalg.slogdet(weight.astype(jnp.float32))
    logdet = jnp.where(
        sign > 0, logabsdet, jnp.where(sign < 0, jnp.nan, -jnp.inf)
    )
    log_det_w = jnp.float32(B * T) * logdet
    return z_out, log_det_w


def make_invertible_weight(key, c: int) -> jax.Array:
    """Matches the module's __init__: QR of a random c x c matrix, first
    column negated if det < 0."""
    w0 = jax.random.normal(key, (c, c), dtype=jnp.float32)
    q, _ = jnp.linalg.qr(w0, mode="reduced")
    det = jnp.linalg.det(q)
    q = jnp.where(det < 0, q.at[:, 0].set(-q[:, 0]), q)
    return q  # (C, C); the conv weight would be q[:, :, None]


if __name__ == "__main__":
    def _bf16_exact(x):
        # Round inputs to bf16-representable values: any bf16-pass MXU matmul
        # then matches the XLA reference up to f32 accumulation rounding,
        # allowing a tight tolerance that catches index_map / tail-mask bugs.
        return x.astype(jnp.bfloat16).astype(jnp.float32)

    key = jax.random.PRNGKey(0)
    k_w, k_z, k_w2, k_z2 = jax.random.split(key, 4)

    # --- Small-shape check (module's toy sizes; single full-extent tile) ----
    B, C, T = 2, 4, 16  # batch, channels, n_of_groups (time)
    weight = _bf16_exact(make_invertible_weight(k_w, C))            # (C, C)
    z = _bf16_exact(jax.random.normal(k_z, (B, C, T), jnp.float32))  # (B, C, T)

    z_out, log_det_w = invertible_1x1_conv_forward(z, weight)
    jax.block_until_ready((z_out, log_det_w))

    z_ref = jnp.einsum("ij,bjt->bit", weight, z)
    assert z_out.shape == (B, C, T)
    assert jnp.allclose(z_out, z_ref, atol=1e-5, rtol=1e-5)
    assert bool(jnp.isfinite(log_det_w))

    # --- Large T, not a multiple of the tile: exercises the cdiv grid with a
    #     masked tail block on every generation (tile_t = 131072 on 64 MiB
    #     VMEM parts, 262144 on 128 MiB parts for this shape). ---------------
    B2, C2, T2 = 2, 8, 300_000
    weight2 = _bf16_exact(make_invertible_weight(k_w2, C2))
    z2 = _bf16_exact(jax.random.normal(k_z2, (B2, C2, T2), jnp.float32))

    z2_out, log_det_w2 = invertible_1x1_conv_forward(z2, weight2)
    jax.block_until_ready((z2_out, log_det_w2))

    z2_ref = jnp.einsum("ij,bjt->bit", weight2, z2)
    assert z2_out.shape == (B2, C2, T2)
    assert jnp.allclose(z2_out, z2_ref, atol=1e-5, rtol=1e-5)
    assert bool(jnp.isfinite(log_det_w2))

    print("KERNEL_OK")
</pallas_src>

<mosaic_0001>
module attributes {stable_mosaic.version = 11 : i64} {
  func.func @_inv1x1_kernel(%arg0: i32, %arg1: memref<4x4xf32, #tpu.memory_space<vmem>>, %arg2: memref<2x4x16xf32, #tpu.memory_space<vmem>>, %arg3: memref<2x4x16xf32, #tpu.memory_space<vmem>>) attributes {dimension_semantics = [#tpu.dimension_semantics<parallel>], iteration_bounds = array<i64: 1>, scalar_prefetch = 0 : i64, scratch_operands = 0 : i64, tpu.core_type = #tpu.core_type<tc>, window_params = [{pipeline_mode = #tpu.pipeline_mode<synchronous>, transform_indices = @transform_0, window_bounds = array<i64: 4, 4>}, {transform_indices = @transform_1, window_bounds = array<i64: 2, 4, 16>}, {transform_indices = @transform_2, window_bounds = array<i64: 2, 4, 16>}]} {
    %c0 = arith.constant 0 : index
    %c0_0 = arith.constant 0 : index
    %0 = vector.load %arg1[%c0, %c0_0] : memref<4x4xf32, #tpu.memory_space<vmem>>, vector<4x4xf32>
    %c0_1 = arith.constant 0 : index
    %c0_2 = arith.constant 0 : index
    %c0_3 = arith.constant 0 : index
    %1 = vector.load %arg2[%c0_1, %c0_2, %c0_3] : memref<2x4x16xf32, #tpu.memory_space<vmem>>, vector<1x4x16xf32>
    %2 = vector.shape_cast %1 : vector<1x4x16xf32> to vector<4x16xf32>
    %cst = arith.constant dense<0.000000e+00> : vector<4x16xf32>
    %3 = tpu.matmul %0, %2, %cst {dimension_numbers = #tpu.dot_dimension_numbers<[1], [0], [0], [1], [0, 0, 1, 1], [], []>} : vector<4x4xf32>, vector<4x16xf32>, vector<4x16xf32> -> vector<4x16xf32>
    %c0_4 = arith.constant 0 : index
    %c0_5 = arith.constant 0 : index
    %c0_6 = arith.constant 0 : index
    %4 = vector.load %arg3[%c0_4, %c0_5, %c0_6] : memref<2x4x16xf32, #tpu.memory_space<vmem>>, vector<1x4x16xf32>
    %5 = vector.shape_cast %4 : vector<1x4x16xf32> to vector<4x16xf32>
    %6 = vector.shape_cast %3 : vector<4x16xf32> to vector<1x4x16xf32>
    tpu.vector_store %arg3[%c0_4, %c0_5, %c0_6], %6 {strides = array<i32>} : memref<2x4x16xf32, #tpu.memory_space<vmem>>, vector<1x4x16xf32>,
    %c1 = arith.constant 1 : index
    %c0_7 = arith.constant 0 : index
    %c0_8 = arith.constant 0 : index
    %7 = vector.load %arg2[%c1, %c0_7, %c0_8] : memref<2x4x16xf32, #tpu.memory_space<vmem>>, vector<1x4x16xf32>
    %8 = vector.shape_cast %7 : vector<1x4x16xf32> to vector<4x16xf32>
    %cst_9 = arith.constant dense<0.000000e+00> : vector<4x16xf32>
    %9 = tpu.matmul %0, %8, %cst_9 {dimension_numbers = #tpu.dot_dimension_numbers<[1], [0], [0], [1], [0, 0, 1, 1], [], []>} : vector<4x4xf32>, vector<4x16xf32>, vector<4x16xf32> -> vector<4x16xf32>
    %c1_10 = arith.constant 1 : index
    %c0_11 = arith.constant 0 : index
    %c0_12 = arith.constant 0 : index
    %10 = vector.load %arg3[%c1_10, %c0_11, %c0_12] : memref<2x4x16xf32, #tpu.memory_space<vmem>>, vector<1x4x16xf32>
    %11 = vector.shape_cast %10 : vector<1x4x16xf32> to vector<4x16xf32>
    %12 = vector.shape_cast %9 : vector<4x16xf32> to vector<1x4x16xf32>
    tpu.vector_store %arg3[%c1_10, %c0_11, %c0_12], %12 {strides = array<i32>} : memref<2x4x16xf32, #tpu.memory_space<vmem>>, vector<1x4x16xf32>,
    return
  }
  func.func @transform_0(%arg0: i32) -> (i32, i32) {
    %c0_i32 = arith.constant 0 : i32
    %c0_i32_0 = arith.constant 0 : i32
    %c0_i32_1 = arith.constant 0 : i32
    return %c0_i32, %c0_i32_0 : i32, i32
  }
  func.func @transform_1(%arg0: i32) -> (i32, i32, i32) {
    %c0_i32 = arith.constant 0 : i32
    %c0_i32_0 = arith.constant 0 : i32
    %c0_i32_1 = arith.constant 0 : i32
    return %c0_i32, %c0_i32_0, %arg0 : i32, i32, i32
  }
  func.func @transform_2(%arg0: i32) -> (i32, i32, i32) {
    %c0_i32 = arith.constant 0 : i32
    %c0_i32_0 = arith.constant 0 : i32
    %c0_i32_1 = arith.constant 0 : i32
    return %c0_i32, %c0_i32_0, %arg0 : i32, i32, i32
  }
}

</mosaic_0001>

<bundles_post_ra>
// kernel: tpu_custom_call.1
= control target key start
LH: loop header
LB: loop body
LE: loop exit
PB: predicated region body
PF: predicated region fallthrough
CT: control target
= control target key end

     0   :  { %7 = vsyncpa [#allocation3], 0  ;;  %s383_s0 = inlined_call_operand.hbm [shape: f32[4,4], index: 0, kind: input, shape index: {}]   ;;  %s384_s1 = inlined_call_operand.hbm [shape: f32[2,4,16], index: 1, kind: input, shape index: {}]   ;;  %s385_s2 = inlined_call_operand.hbm [shape: f32[2,4,16], index: 2, kind: output, shape index: {}]  }
   0x1   :  { %8 = vsyncpa [#allocation6], 0 }
   0x2   :  { %9 = vsyncpa [#allocation4], 0  ;;  %s312_s9 = smov [#allocation2]   ;;  %s313_s11 = smov [#allocation5]  }
   0x3   :  { %s16_s10 = sshll.u32 %s312_s9, 4  ;;  %s25_s12 = sshll.u32 %s313_s11, 4  ;;  %s17_s10 = int_to_ptr.vmem [resolvable:$true] %s16_s10  ;;  %s334_s12 = int_to_ptr.vmem [resolvable:$true] %s25_s12 }
   0x4   :  { %s240_s15 = scalar_lea.hbm %s383_s0, 64 }
   0x5   :  { %p241_p0 = scmp.ne.s32.totalorder %s383_s0, %s240_s15  ;;  %p244_p1 = scmp.lt.u32.totalorder %s240_s15, %s383_s0 }
   0x7   :  { %p246_p2 = pnand %p244_p1, %p241_p0 }
   0x9   :  { %249 = shalt.err (!%p246_p2)
}
   0xa   :  { %s250_s20 = scalar_lea.vmem %s17_s10, 64  ;;  %p255_p4 = scmp.lt.s32.totalorder %s17_s10, %s17_s10 }
   0xb   :  { %p251_p3 = scmp.ne.s32.totalorder %s17_s10, %s250_s20  ;;  %p256_p5 = scmp.lt.s32.totalorder %s250_s20, %s250_s20 }
   0xd   :  { %p257_p6 = por %p256_p5, %p255_p4 }
   0xf   :  { %p258_p7 = pnand %p257_p6, %p251_p3 }
  0x11   :  { %261 = shalt.err (!%p258_p7)
}
  0x12   :  { %19 = dma.hbm_to_vmem [thread:$0]  %s383_s0, 64, %s17_s10, [#allocation3]  }
  0x13   :  { %s262_s25 = scalar_lea.hbm %s384_s1, 128 }
  0x14   :  { %p263_p8 = scmp.ne.s32.totalorder %s384_s1, %s262_s25  ;;  %p266_p9 = scmp.lt.u32.totalorder %s262_s25, %s384_s1 }
  0x16   :  { %p268_p10 = pnand %p266_p9, %p263_p8 }
  0x18   :  { %271 = shalt.err (!%p268_p10)
}
  0x19   :  { %s272_s30 = scalar_lea.vmem %s334_s12, 128  ;;  %p277_p12 = scmp.lt.s32.totalorder %s334_s12, %s334_s12 }
  0x1a   :  { %p273_p11 = scmp.ne.s32.totalorder %s334_s12, %s272_s30  ;;  %p278_p13 = scmp.lt.s32.totalorder %s272_s30, %s272_s30 }
  0x1c   :  { %p279_p0 = por %p278_p13, %p277_p12 }
  0x1e   :  { %p280_p1 = pnand %p279_p0, %p273_p11 }
  0x20   :  { %283 = shalt.err (!%p280_p1)
}
  0x21   :  { %s314_s0 = smov 64   ;;  %s315_s3 = smov 4  }
  0x22   :  { %31 = dma.hbm_to_vmem [thread:$0]  %s384_s1, 128, %s334_s12, [#allocation6], %s314_s0, %s314_s0, %s315_s3  }
  0x23   :  { %306 = dma.done.wait [#allocation3], 64  }
  0x24   :  { %307 = vsyncadd [#allocation3], 4294967232 }
  0x25   :  { %308 = dma.done.wait [#allocation6], 128  }
  0x26   :  { %309 = vsyncadd [#allocation6], 4294967168  ;;  %v316_v0 = vmov 0.0   ;;  %vm317_vm0 = vmmov 0   ;;  %vm44_vm1 = vcmask 1043456   ;;  %vm40_vm2 = vcmask 31744  }
  0x27   :  { %223 = vmatprep.subr.mxu0 %v316_v0  ;;  %228 = vmatprep.subr.mxu1 %v316_v0  ;;  %v39_v1 = vld [vmem:[#allocation5] sm:$0xf]  ;;  %v121_v2 = vld [vmem:[#allocation5 + $0x4] sm:$0xf]  ;;  %v38_v3 = vld [vmem:[#allocation2] sm:$0xf] }
  0x28   :  { %225 = vmatprep.mubr.msk.f32.mxu0 %vm317_vm0, %v316_v0  ;;  %230 = vmatprep.mubr.msk.f32.mxu1 %vm317_vm0, %v316_v0  ;;  %s318_s1 = smov [#allocation7]   ;;  %vm118_vm3 = vcmask 125952  }
  0x29   :  { %224 = vmatpush3.msk.msra.mxu0 %vm44_vm1, %v39_v1  ;;  %229 = vmatpush3.msk.msra.mxu1 %vm44_vm1, %v121_v2  ;;  %s202_s6 = sshll.u32 %s318_s1, 4  ;;  %s203_s6 = int_to_ptr.vmem [resolvable:$true] %s202_s6 }
  0x2a   :  { %226 = vmatmul.mubr.msk.f32.vlgmr.msra.gmra.mrb[0].mxu0 %vm40_vm2, %v38_v3  ;;  %231 = vmatmul.mubr.msk.f32.vlgmr.msra.gmra.mrb[0].mxu1 %vm40_vm2, %v38_v3  ;;  %s284_s7 = scalar_lea.vmem %s203_s6, 128  ;;  %p289_p3 = scmp.lt.s32.totalorder %s203_s6, %s203_s6 }
  0x2b   :  { %p285_p2 = scmp.ne.s32.totalorder %s203_s6, %s284_s7  ;;  %p290_p4 = scmp.lt.s32.totalorder %s284_s7, %s284_s7 }
  0x2d   :  { %p291_p5 = por %p290_p4, %p289_p3 }
  0x2f   :  { %p292_p6 = pnand %p291_p5, %p285_p2 }
  0xfd   :  { %v114_v4 = vpop.f32.mrb[0].mxu0  ;;  %v191_v5 = vpop.f32.mrb[0].mxu1 }
  0xfe   :  { %119 = vst.msk [vmem:[#allocation7] sm:$0xf] %vm118_vm3, %v114_v4  ;;  %196 = vst.msk [vmem:[#allocation7 + $0x4] sm:$0xf] %vm118_vm3, %v191_v5  ;;  %v227_v6 = vpop.f32.mrb[1].mxu0  ;;  %v232_v7 = vpop.f32.mrb[1].mxu1 }
  0xff   :  { %295 = shalt.err (!%p292_p6)
}
 0x100   :  { %s296_s10 = scalar_lea.hbm %s385_s2, 128 }
 0x101   :  { %p297_p7 = scmp.ne.s32.totalorder %s385_s2, %s296_s10  ;;  %p300_p8 = scmp.lt.u32.totalorder %s296_s10, %s385_s2 }
 0x103   :  { %p302_p9 = pnand %p300_p8, %p297_p7 }
 0x105   :  { %305 = shalt.err (!%p302_p9)
}
 0x106   :  { %208 = dma.vmem_to_hbm [thread:$0]  %s203_s6, 128, %s385_s2, [#allocation4], %s314_s0, %s314_s0, %s315_s3  }
 0x107   :  { %310 = dma.done.wait [#allocation4], 128  }
 0x108   :  { %311 = vsyncadd [#allocation4], 4294967168 }
 0x109   :  { %212 = vsyncpa [#allocation3], 1 }
 0x10a   :  { %213 = vsyncpa [#allocation6], 1 }
 0x10b   :  { %214 = vsyncpa [#allocation4], 1 }

</bundles_post_ra>
